<compile_context>
chip_gen: v6e
topology: v6e:2x2x1
jax: 0.10.0
libtpu: 0.0.40
codegen_flags: <defaults>
</compile_context>

<pallas_src>
import jax
import jax.numpy as jnp
from jax.experimental import pallas as pl
from jax.experimental.pallas import tpu as pltpu


def _round_up(x, m):
    return ((x + m - 1) // m) * m


def _cdiv(a, b):
    return -(-a // b)


def _linear_kernel(x_ref, w_ref, b_ref, o_ref):
    # x_ref: [tm, dim], w_ref: [dim, n_way], b_ref: [1, n_way], o_ref: [tm, n_way]
    acc = jnp.dot(x_ref[...], w_ref[...], preferred_element_type=jnp.float32)
    o_ref[...] = (acc + b_ref[...].astype(jnp.float32)).astype(o_ref.dtype)


def prepare_classifier_params(weight, bias, dtype=jnp.float32):
    """One-time parameter prep (NOT in the per-step hot path).

    weight: [n_way, dim]  (PyTorch nn.Linear convention)
    bias:   [n_way]
    returns (w_t [dim, n_way], b_row [1, n_way]) in `dtype`, matching the
    activation dtype so the in-kernel dot does not silently promote.
    """
    w_t = jnp.asarray(weight, dtype).T                      # [dim, n_way]
    b_row = jnp.asarray(bias, dtype).reshape(1, -1)          # [1, n_way]
    return w_t, b_row


def _choose_batch_tile(B, block_b, sublane):
    """Pick the batch tile so the last-tile padding is minimal and the grid
    has >= 2 steps whenever the batch permits (v7x 2-TC sharding)."""
    steps = max(_cdiv(B, block_b), 1)
    if steps == 1 and B >= 2 * sublane:
        steps = 2
    tm = _round_up(_cdiv(B, steps), sublane)
    return tm


def classifier_forward(x, w_t, b_row, *, block_b=1024):
    """Forward of Classifier: y = x @ weight.T + bias.

    x:     [B, dim]
    w_t:   [dim, n_way]  (from prepare_classifier_params)
    b_row: [1, n_way]
    returns [B, n_way]
    """
    B, dim = x.shape
    d_w, n_way = w_t.shape
    assert d_w == dim, "weight/input feature dim mismatch"
    assert b_row.shape == (1, n_way)
    assert w_t.dtype == x.dtype and b_row.dtype == x.dtype, (
        "cast params with prepare_classifier_params(..., dtype=x.dtype)")

    # bf16 (and other sub-32-bit dtypes) pack 2x along sublanes.
    sublane = 8 if jnp.dtype(x.dtype).itemsize >= 4 else 16
    tm = _choose_batch_tile(B, block_b, sublane)
    B_pad = _round_up(B, tm)
    if B_pad != B:
        # Minimal padding (< sublane * n_steps rows) — no large HBM copy.
        x = jnp.pad(x, ((0, B_pad - B), (0, 0)))

    grid = (B_pad // tm,)

    # VMEM budget: double-buffered x/out tiles + (conservatively doubled)
    # resident weight & bias.  Clamp below v7x's 64 MiB physical VMEM.
    dt_bytes = jnp.dtype(x.dtype).itemsize
    vmem_needed = 2 * tm * (dim + n_way) * dt_bytes + 2 * (dim + 1) * n_way * dt_bytes
    vmem_limit = int(min(max(2 * vmem_needed, 4 << 20), 48 << 20))

    out = pl.pallas_call(
        _linear_kernel,
        out_shape=jax.ShapeDtypeStruct((B_pad, n_way), x.dtype),
        grid_spec=pltpu.PrefetchScalarGridSpec(
            num_scalar_prefetch=0,
            grid=grid,
            in_specs=[
                pl.BlockSpec((tm, dim), lambda i: (i, 0)),      # x tile
                pl.BlockSpec((dim, n_way), lambda i: (0, 0)),   # weight (resident)
                pl.BlockSpec((1, n_way), lambda i: (0, 0)),     # bias (resident)
            ],
            out_specs=pl.BlockSpec((tm, n_way), lambda i: (i, 0)),
        ),
        compiler_params=pltpu.CompilerParams(
            dimension_semantics=("parallel",),
            vmem_limit_bytes=vmem_limit,
        ),
    )(x, w_t, b_row)

    return out if B_pad == B else out[:B]


if __name__ == "__main__":
    # Small shapes consistent with the module: feature dim=32, n_way=5, batch=8.
    B, dim, n_way = 8, 32, 5

    key = jax.random.PRNGKey(0)
    kx, kw, kb = jax.random.split(key, 3)

    x = jax.random.normal(kx, (B, dim), dtype=jnp.float32)
    # Deterministic parameter init (shapes follow nn.Linear(dim, n_way)).
    weight = jax.random.normal(kw, (n_way, dim), dtype=jnp.float32) * 0.05
    bias = jax.random.normal(kb, (n_way,), dtype=jnp.float32) * 0.05

    # One-time parameter prep (outside the hot path).
    w_t, b_row = prepare_classifier_params(weight, bias, dtype=x.dtype)

    y = classifier_forward(x, w_t, b_row)
    y = jax.block_until_ready(y)

    y_ref = x @ weight.T + bias
    assert y.shape == (B, n_way)
    assert jnp.allclose(y, y_ref, atol=1e-5, rtol=1e-5)

    # Exercise the tiled / multi-block (>=2 grid steps, non-divisible B) path.
    B2 = 500
    x2 = jax.random.normal(jax.random.PRNGKey(1), (B2, dim), dtype=jnp.float32)
    y2 = jax.block_until_ready(classifier_forward(x2, w_t, b_row))
    y2_ref = x2 @ weight.T + bias
    assert y2.shape == (B2, n_way)
    assert jnp.allclose(y2, y2_ref, atol=1e-5, rtol=1e-5)

    # bf16 activation path (tm rounded to 16-sublane multiples).
    x3 = x2.astype(jnp.bfloat16)
    w_t16, b_row16 = prepare_classifier_params(weight, bias, dtype=jnp.bfloat16)
    y3 = jax.block_until_ready(classifier_forward(x3, w_t16, b_row16))
    y3_ref = (x3.astype(jnp.float32) @ jnp.asarray(weight, jnp.float32).T
              + jnp.asarray(bias, jnp.float32))
    assert y3.shape == (B2, n_way)
    assert jnp.allclose(y3.astype(jnp.float32), y3_ref, atol=3e-2, rtol=3e-2)

    print("KERNEL_OK")
</pallas_src>

<mosaic_0001>
module attributes {stable_mosaic.version = 11 : i64} {
  func.func @_linear_kernel(%arg0: i32, %arg1: memref<8x32xf32, #tpu.memory_space<vmem>>, %arg2: memref<32x5xf32, #tpu.memory_space<vmem>>, %arg3: memref<1x5xf32, #tpu.memory_space<vmem>>, %arg4: memref<8x5xf32, #tpu.memory_space<vmem>>) attributes {dimension_semantics = [#tpu.dimension_semantics<parallel>], iteration_bounds = array<i64: 1>, scalar_prefetch = 0 : i64, scratch_operands = 0 : i64, tpu.core_type = #tpu.core_type<tc>, window_params = [{transform_indices = @transform_0, window_bounds = array<i64: 8, 32>}, {pipeline_mode = #tpu.pipeline_mode<synchronous>, transform_indices = @transform_1, window_bounds = array<i64: 32, 5>}, {pipeline_mode = #tpu.pipeline_mode<synchronous>, transform_indices = @transform_2, window_bounds = array<i64: 1, 5>}, {transform_indices = @transform_3, window_bounds = array<i64: 8, 5>}]} {
    %c0 = arith.constant 0 : index
    %c0_0 = arith.constant 0 : index
    %0 = vector.load %arg1[%c0, %c0_0] : memref<8x32xf32, #tpu.memory_space<vmem>>, vector<8x32xf32>
    %c0_1 = arith.constant 0 : index
    %c0_2 = arith.constant 0 : index
    %1 = vector.load %arg2[%c0_1, %c0_2] : memref<32x5xf32, #tpu.memory_space<vmem>>, vector<32x5xf32>
    %cst = arith.constant dense<0.000000e+00> : vector<8x5xf32>
    %2 = tpu.matmul %0, %1, %cst {dimension_numbers = #tpu.dot_dimension_numbers<[1], [0], [0], [1], [0, 0, 1, 1], [], []>} : vector<8x32xf32>, vector<32x5xf32>, vector<8x5xf32> -> vector<8x5xf32>
    %c0_3 = arith.constant 0 : index
    %c0_4 = arith.constant 0 : index
    %3 = vector.load %arg3[%c0_3, %c0_4] : memref<1x5xf32, #tpu.memory_space<vmem>>, vector<1x5xf32>
    %4 = vector.broadcast %3 : vector<1x5xf32> to vector<8x5xf32>
    %5 = arith.addf %2, %4 : vector<8x5xf32>
    %c0_5 = arith.constant 0 : index
    %c0_6 = arith.constant 0 : index
    %6 = vector.load %arg4[%c0_5, %c0_6] : memref<8x5xf32, #tpu.memory_space<vmem>>, vector<8x5xf32>
    tpu.vector_store %arg4[%c0_5, %c0_6], %5 {strides = array<i32>} : memref<8x5xf32, #tpu.memory_space<vmem>>, vector<8x5xf32>,
    return
  }
  func.func @transform_0(%arg0: i32) -> (i32, i32) {
    %c0_i32 = arith.constant 0 : i32
    %c0_i32_0 = arith.constant 0 : i32
    return %arg0, %c0_i32 : i32, i32
  }
  func.func @transform_1(%arg0: i32) -> (i32, i32) {
    %c0_i32 = arith.constant 0 : i32
    %c0_i32_0 = arith.constant 0 : i32
    %c0_i32_1 = arith.constant 0 : i32
    return %c0_i32, %c0_i32_0 : i32, i32
  }
  func.func @transform_2(%arg0: i32) -> (i32, i32) {
    %c0_i32 = arith.constant 0 : i32
    %c0_i32_0 = arith.constant 0 : i32
    %c0_i32_1 = arith.constant 0 : i32
    return %c0_i32, %c0_i32_0 : i32, i32
  }
  func.func @transform_3(%arg0: i32) -> (i32, i32) {
    %c0_i32 = arith.constant 0 : i32
    %c0_i32_0 = arith.constant 0 : i32
    return %arg0, %c0_i32 : i32, i32
  }
}

</mosaic_0001>

<bundles_post_ra>
// kernel: tpu_custom_call.1
= control target key start
LH: loop header
LB: loop body
LE: loop exit
PB: predicated region body
PF: predicated region fallthrough
CT: control target
= control target key end

     0   :  { %v160_v1 = vmov 0.0   ;;  %vm161_vm0 = vmmov 0   ;;  %s204_s0 = inlined_call_operand.vmem [shape: f32[8,32], index: 0, kind: input, shape index: {}]   ;;  %s205_s1 = inlined_call_operand.vmem [shape: f32[32,5], index: 1, kind: input, shape index: {}]   ;;  %s206_s2 = inlined_call_operand.vmem [shape: f32[1,5], index: 2, kind: input, shape index: {}]   ;;  %s207_s3 = inlined_call_operand.hbm [shape: f32[8,5], index: 3, kind: output, shape index: {}]  }
   0x1   :  { %v19_v0 = vld [vmem:[%s205_s1 + $0x18] sm:$0xff]  ;;  %124 = vmatprep.subr.mxu0 %v160_v1  ;;  %v18_v2 = vld [vmem:[%s205_s1 + $0x10] sm:$0xff]  ;;  %132 = vmatprep.mubr.msk.f32.mxu0 %vm161_vm0, %v160_v1 }
   0x2   :  { %125 = vmatpush3.msra.mxu0 %v19_v0 }
   0x3   :  { %8 = vsyncpa [#allocation3], 0  ;;  %126 = vmatprep.subr.mxu0 %v160_v1  ;;  %v17_v3 = vld [vmem:[%s205_s1 + $0x8] sm:$0xff]  ;;  %v16_v4 = vld [vmem:[%s205_s1] sm:$0xff]  ;;  %vm27_vm1 = vcmask 261120   ;;  %s162_s24 = smov [#allocation2]  }
   0x4   :  { %127 = vmatpush3.msra.mxu0 %v18_v2  ;;  %v15_v5 = vld [vmem:[%s204_s0] sm:$0xff]  ;;  %s109_s25 = sshll.u32 %s162_s24, 4  ;;  %vm101_vm2 = vcmask 39936   ;;  %s110_s25 = int_to_ptr.vmem [resolvable:$true] %s109_s25 }
   0x5   :  { %128 = vmatprep.subr.mxu0 %v160_v1  ;;  %v117_v6 = vld [vmem:[%s206_s2] ss:$0 sm:$0xff]  ;;  %s138_s1 = scalar_lea.vmem %s110_s25, 128  ;;  %p143_p1 = scmp.lt.s32.totalorder %s110_s25, %s110_s25 }
   0x6   :  { %129 = vmatpush3.msra.mxu0 %v17_v3  ;;  %p139_p0 = scmp.ne.s32.totalorder %s110_s25, %s138_s1  ;;  %p144_p2 = scmp.lt.s32.totalorder %s138_s1, %s138_s1 }
   0x7   :  { %130 = vmatprep.subr.mxu0 %v160_v1 }
   0x8   :  { %131 = vmatpush3.msra.mxu0 %v16_v4  ;;  %p145_p3 = por %p144_p2, %p143_p1 }
   0x9   :  { %133 = vmatmul.mubr.msk.f32.vlgmr.msra.gmra.mxu0 %vm27_vm1, %v15_v5 }
   0xa   :  { %p146_p4 = pnand %p145_p3, %p139_p0 }
  0xc9   :  { %v97_v7 = vpop.f32.mrf.mxu0 }
  0xca   :  { %v98_v8 = vadd.f32 %v117_v6, %v97_v7 }
  0xcb   :  { %v134_v9 = vpop.f32.mrf.mxu0 }
  0xcc   :  { %102 = vst.msk [vmem:[#allocation2] sm:$0xff] %vm101_vm2, %v98_v8 }
  0xcd   :  { %149 = shalt.err (!%p146_p4)
}
  0xce   :  { %112 = dma.vmem_to_hbm [thread:$0]  %s110_s25, 128, %s207_s3, [#allocation3]  }
  0xcf   :  { %158 = dma.done.wait [#allocation3], 128  }
  0xd0   :  { %159 = vsyncadd [#allocation3], 4294967168 }
  0xd1   :  { %116 = vsyncpa [#allocation3], 1 }

</bundles_post_ra>
